<compile_context>
chip_gen: v6e
topology: v6e:2x2x1
jax: 0.10.0
libtpu: 0.0.40
codegen_flags: <defaults>
</compile_context>

<pallas_src>
import functools

import jax
import jax.numpy as jnp
from jax.experimental import pallas as pl
from jax.experimental.pallas import tpu as pltpu


def _round_up(x, m):
    return (x + m - 1) // m * m


def gru_recurrence_kernel(gi_ref, h0_ref, w_hh_ref, b_hh_ref,
                          out_ref, h_out_ref, *, hidden_size, chunk, seq_len):
    """One grid step = one time *chunk*. The serial per-timestep recurrence runs
    in a lax.fori_loop; the hidden state is carried across chunks in the
    resident (1, H) h_out block (constant output index_map on the serial axis).
    """
    H = hidden_size
    c = pl.program_id(0)

    # Initialize the carried hidden state from the caller-supplied h0.
    @pl.when(c == 0)
    def _init():
        h_out_ref[...] = h0_ref[...]

    w_hh = w_hh_ref[...]                  # (H, 3H) bf16, VMEM-resident
    b_hh = b_hh_ref[...]                  # (1, 3H) f32

    # Number of valid timesteps in this chunk (the last chunk may be partial).
    steps = jnp.minimum(chunk, seq_len - c * chunk)

    def step(t, h):
        # Precomputed input-projection gates for this timestep (f32).
        gi = gi_ref[pl.ds(t, 1), :]                                   # (1, 3H)
        # Recurrent projection: bf16 x bf16 -> f32 accumulation on the MXU.
        gh = jnp.dot(h.astype(jnp.bfloat16), w_hh,
                     preferred_element_type=jnp.float32) + b_hh       # (1, 3H)

        # Gate order [r, z, n] (PyTorch nn.GRU convention); H is a multiple of
        # 128 so these slices are lane-aligned views.
        i_r, i_z, i_n = gi[:, 0:H], gi[:, H:2 * H], gi[:, 2 * H:3 * H]
        h_r, h_z, h_n = gh[:, 0:H], gh[:, H:2 * H], gh[:, 2 * H:3 * H]

        r = jax.nn.sigmoid(i_r + h_r)
        z = jax.nn.sigmoid(i_z + h_z)
        n = jnp.tanh(i_n + r * h_n)       # b_hn correctly inside the r term
        h_new = (1.0 - z) * n + z * h     # f32, (1, H)

        # Accumulate the ReLU'd output into the chunk's VMEM output block; it is
        # written back to HBM once per chunk as one lane-dense slab.
        out_ref[pl.ds(t, 1), :] = jnp.maximum(h_new, 0.0).astype(out_ref.dtype)
        return h_new

    h_final = jax.lax.fori_loop(0, steps, step, h_out_ref[...])
    h_out_ref[...] = h_final


def _vmem_limit_bytes(H, tc):
    """Resident weights + pipelined GI/output chunks, with headroom."""
    w_hh = 3 * H * H * 2                 # bf16 W_hh, single-buffered
    gi = 2 * tc * 3 * H * 4              # double-buffered GI chunk (f32)
    out = 2 * tc * H * 4                 # double-buffered output chunk (f32)
    small = 32 * H * 4                   # h0 / h_out / biases / slack
    need = w_hh + gi + out + small
    return int(min(max(2 * need, 8 << 20), 64 << 20))


@functools.partial(jax.jit, static_argnames=("hidden_size", "time_chunk"))
def _encoder_rnn_seq(tokens, hidden, embedding, w_ih_t, w_hh_t, b_ih, b_hh,
                     *, hidden_size, time_chunk=256):
    """Fused sequence encoder.

    tokens:    (T,) int32 token ids
    hidden:    (1, 1, H) f32 initial hidden state
    embedding: (V, H) bf16; w_ih_t / w_hh_t: (H, 3H) bf16; b_*: (3H,) f32
    Returns (outputs (T, 1, H) f32 [relu'd], final hidden (1, 1, H) f32).
    """
    H = hidden_size
    T = tokens.shape[0]
    tokens = tokens.astype(jnp.int32)

    # ---- Phase 1: batched input projection (hoisted out of the recurrence) --
    x = jnp.take(embedding, tokens, axis=0)                       # (T, H) bf16
    gi = (jnp.dot(x, w_ih_t, preferred_element_type=jnp.float32)
          + b_ih.reshape(1, 3 * H).astype(jnp.float32))           # (T, 3H) f32

    # ---- Phase 2: serial recurrence, one pallas_call over time chunks -------
    tc = min(time_chunk, _round_up(T, 8))     # chunk length (multiple of 8)
    t_pad = _round_up(T, tc)
    num_chunks = t_pad // tc
    if t_pad != T:
        gi = jnp.pad(gi, ((0, t_pad - T), (0, 0)))

    h0 = hidden.reshape(1, H).astype(jnp.float32)
    b_hh2 = b_hh.reshape(1, 3 * H).astype(jnp.float32)

    kernel = functools.partial(gru_recurrence_kernel,
                               hidden_size=H, chunk=tc, seq_len=T)

    outs, h_new = pl.pallas_call(
        kernel,
        out_shape=(jax.ShapeDtypeStruct((t_pad, H), jnp.float32),
                   jax.ShapeDtypeStruct((1, H), jnp.float32)),
        grid=(num_chunks,),
        in_specs=[
            # per-chunk block of precomputed input gates
            pl.BlockSpec((tc, 3 * H), lambda c: (c, 0)),
            # h0 / W_hh / b_hh: constant index -> DMA'd once, single-buffered
            pl.BlockSpec((1, H), lambda c: (0, 0),
                         pipeline_mode=pl.Buffered(1)),
            pl.BlockSpec((H, 3 * H), lambda c: (0, 0),
                         pipeline_mode=pl.Buffered(1)),
            pl.BlockSpec((1, 3 * H), lambda c: (0, 0),
                         pipeline_mode=pl.Buffered(1)),
        ],
        out_specs=(
            # ReLU'd outputs: one lane-dense (tc, H) slab store per chunk
            pl.BlockSpec((tc, H), lambda c: (c, 0)),
            # hidden carry: resident across the serial chunk axis
            pl.BlockSpec((1, H), lambda c: (0, 0)),
        ),
        compiler_params=pltpu.CompilerParams(
            dimension_semantics=("arbitrary",),       # recurrence is serial
            vmem_limit_bytes=_vmem_limit_bytes(H, tc)),
    )(gi, h0, w_hh_t, b_hh2)

    return outs[:T].reshape(T, 1, H), h_new.reshape(1, 1, H)


def encoder_rnn_encode_sequence(tokens, hidden, params, time_chunk=256):
    """Encode a whole token sequence (T GRU steps) with one recurrent kernel."""
    H = params["hidden_size"]
    assert H % 128 == 0, "hidden_size must be a multiple of 128 (lane width)"
    return _encoder_rnn_seq(tokens, hidden,
                            params["embedding"], params["w_ih_t"],
                            params["w_hh_t"], params["b_ih"], params["b_hh"],
                            hidden_size=H, time_chunk=time_chunk)


def encoder_rnn_forward(token, hidden, params):
    """Single-step forward matching the PyTorch module's forward():
    returns (relu(output) (1,1,H), hidden (1,1,H))."""
    H = params["hidden_size"]
    tokens = jnp.asarray(token, jnp.int32).reshape(1)
    outs, h_new = encoder_rnn_encode_sequence(tokens, hidden, params)
    return outs.reshape(1, 1, H), h_new


def reference_forward_seq(tokens, hidden, params):
    """Pure-JAX per-step reference of the same math (bf16 weights, f32 gates)."""
    H = params["hidden_size"]
    w_ih = params["w_ih_t"]
    w_hh = params["w_hh_t"]
    b_ih = params["b_ih"].astype(jnp.float32)
    b_hh = params["b_hh"].astype(jnp.float32)
    h = hidden.reshape(1, H).astype(jnp.float32)
    outs = []
    for t in range(int(tokens.shape[0])):
        x = params["embedding"][tokens[t]].reshape(1, H)        # bf16
        gi = jnp.dot(x, w_ih, preferred_element_type=jnp.float32) + b_ih
        gh = jnp.dot(h.astype(jnp.bfloat16), w_hh,
                     preferred_element_type=jnp.float32) + b_hh
        i_r, i_z, i_n = gi[:, 0:H], gi[:, H:2 * H], gi[:, 2 * H:3 * H]
        h_r, h_z, h_n = gh[:, 0:H], gh[:, H:2 * H], gh[:, 2 * H:3 * H]
        r = jax.nn.sigmoid(i_r + h_r)
        z = jax.nn.sigmoid(i_z + h_z)
        n = jnp.tanh(i_n + r * h_n)
        h = (1.0 - z) * n + z * h
        outs.append(jnp.maximum(h, 0.0))
    return jnp.stack(outs, axis=0).reshape(-1, 1, H), h.reshape(1, 1, H)


def init_params(key, input_size, hidden_size):
    H = hidden_size
    k_emb, k_wi, k_wh, k_bi, k_bh = jax.random.split(key, 5)
    bound = 1.0 / float(jnp.sqrt(jnp.float32(H)))
    # PyTorch: embedding ~ N(0,1); GRU params ~ U(-1/sqrt(H), 1/sqrt(H)).
    # Weights / embedding stored bf16 (intentional precision trade-off); biases f32.
    return {
        "hidden_size": H,
        "embedding": jax.random.normal(k_emb, (input_size, H),
                                       jnp.float32).astype(jnp.bfloat16),
        # stored transposed vs torch's (3H, H) so the kernel does x @ W.
        "w_ih_t": jax.random.uniform(k_wi, (H, 3 * H), jnp.float32,
                                     -bound, bound).astype(jnp.bfloat16),
        "w_hh_t": jax.random.uniform(k_wh, (H, 3 * H), jnp.float32,
                                     -bound, bound).astype(jnp.bfloat16),
        "b_ih": jax.random.uniform(k_bi, (3 * H,), jnp.float32, -bound, bound),
        "b_hh": jax.random.uniform(k_bh, (3 * H,), jnp.float32, -bound, bound),
    }


if __name__ == "__main__":
    INPUT_SIZE = 100   # vocab size
    HIDDEN = 256       # small stand-in for hidden_size=512; multiple of 128
    SEQ_LEN = 12       # not a multiple of 8 -> exercises the padded tail

    key = jax.random.PRNGKey(0)
    k_params, k_tok = jax.random.split(key)
    params = init_params(k_params, INPUT_SIZE, HIDDEN)

    tokens = jax.random.randint(k_tok, (SEQ_LEN,), 0, INPUT_SIZE, dtype=jnp.int32)
    hidden = jnp.zeros((1, 1, HIDDEN), jnp.float32)   # initHidden()

    # ---- single-step forward (matches the PyTorch module's forward()) ----
    out1, h1 = encoder_rnn_forward(tokens[0], hidden, params)
    out1, h1 = jax.block_until_ready((out1, h1))
    out1_ref, h1_ref = reference_forward_seq(tokens[:1], hidden, params)
    assert out1.shape == (1, 1, HIDDEN) and h1.shape == (1, 1, HIDDEN)
    assert jnp.allclose(out1, out1_ref.reshape(1, 1, HIDDEN), atol=2e-3, rtol=2e-3)
    assert jnp.allclose(h1, h1_ref, atol=2e-3, rtol=2e-3)

    # ---- fused full-sequence encode (T GRU steps, one recurrent kernel) ----
    outs_ref, h_final_ref = reference_forward_seq(tokens, hidden, params)

    outs, h_final = encoder_rnn_encode_sequence(tokens, hidden, params)
    outs, h_final = jax.block_until_ready((outs, h_final))
    assert outs.shape == (SEQ_LEN, 1, HIDDEN) and h_final.shape == (1, 1, HIDDEN)
    assert jnp.allclose(outs, outs_ref, atol=2e-3, rtol=2e-3)
    assert jnp.allclose(h_final, h_final_ref, atol=2e-3, rtol=2e-3)

    # ---- same sequence with small time chunks (multi-chunk hidden carry) ----
    outs_c, h_final_c = encoder_rnn_encode_sequence(tokens, hidden, params,
                                                    time_chunk=8)
    outs_c, h_final_c = jax.block_until_ready((outs_c, h_final_c))
    assert jnp.allclose(outs_c, outs_ref, atol=2e-3, rtol=2e-3)
    assert jnp.allclose(h_final_c, h_final_ref, atol=2e-3, rtol=2e-3)

    print("KERNEL_OK")
</pallas_src>

<mosaic_0001>
module attributes {stable_mosaic.version = 11 : i64} {
  func.func @gru_recurrence_kernel(%arg0: i32, %arg1: memref<8x768xf32, #tpu.memory_space<vmem>>, %arg2: memref<1x256xf32, #tpu.memory_space<vmem>>, %arg3: memref<256x768xbf16, #tpu.memory_space<vmem>>, %arg4: memref<1x768xf32, #tpu.memory_space<vmem>>, %arg5: memref<8x256xf32, #tpu.memory_space<vmem>>, %arg6: memref<1x256xf32, #tpu.memory_space<vmem>>) attributes {dimension_semantics = [#tpu.dimension_semantics<arbitrary>], iteration_bounds = array<i64: 1>, scalar_prefetch = 0 : i64, scratch_operands = 0 : i64, tpu.core_type = #tpu.core_type<tc>, window_params = [{transform_indices = @transform_0, window_bounds = array<i64: 8, 768>}, {pipeline_mode = #tpu.pipeline_mode<synchronous>, transform_indices = @transform_1, window_bounds = array<i64: 1, 256>}, {pipeline_mode = #tpu.pipeline_mode<synchronous>, transform_indices = @transform_2, window_bounds = array<i64: 256, 768>}, {pipeline_mode = #tpu.pipeline_mode<synchronous>, transform_indices = @transform_3, window_bounds = array<i64: 1, 768>}, {transform_indices = @transform_4, window_bounds = array<i64: 8, 256>}, {pipeline_mode = #tpu.pipeline_mode<synchronous>, transform_indices = @transform_5, window_bounds = array<i64: 1, 256>}]} {
    %c0_i32 = arith.constant 0 : i32
    %0 = arith.cmpi eq, %arg0, %c0_i32 : i32
    %1 = arith.extui %0 : i1 to i32
    %c0_i32_0 = arith.constant 0 : i32
    %2 = arith.cmpi ne, %1, %c0_i32_0 : i32
    scf.if %2 {
      %c0_11 = arith.constant 0 : index
      %c0_12 = arith.constant 0 : index
      %13 = vector.load %arg2[%c0_11, %c0_12] : memref<1x256xf32, #tpu.memory_space<vmem>>, vector<1x256xf32>
      %c0_13 = arith.constant 0 : index
      %c0_14 = arith.constant 0 : index
      %14 = vector.load %arg6[%c0_13, %c0_14] : memref<1x256xf32, #tpu.memory_space<vmem>>, vector<1x256xf32>
      tpu.vector_store %arg6[%c0_13, %c0_14], %13 {strides = array<i32>} : memref<1x256xf32, #tpu.memory_space<vmem>>, vector<1x256xf32>,
    } else {
    }
    %c0 = arith.constant 0 : index
    %c0_1 = arith.constant 0 : index
    %3 = vector.load %arg3[%c0, %c0_1] : memref<256x768xbf16, #tpu.memory_space<vmem>>, vector<256x768xbf16>
    %c0_2 = arith.constant 0 : index
    %c0_3 = arith.constant 0 : index
    %4 = vector.load %arg4[%c0_2, %c0_3] : memref<1x768xf32, #tpu.memory_space<vmem>>, vector<1x768xf32>
    %c8_i32 = arith.constant 8 : i32
    %5 = arith.muli %arg0, %c8_i32 : i32
    %c1_i32 = arith.constant 1 : i32
    %6 = arith.subi %c1_i32, %5 : i32
    %c8_i32_4 = arith.constant 8 : i32
    %7 = arith.minsi %c8_i32_4, %6 : i32
    %c0_5 = arith.constant 0 : index
    %c0_6 = arith.constant 0 : index
    %8 = vector.load %arg6[%c0_5, %c0_6] : memref<1x256xf32, #tpu.memory_space<vmem>>, vector<1x256xf32>
    %c0_i32_7 = arith.constant 0 : i32
    %9 = arith.subi %7, %c0_i32_7 : i32
    %10 = arith.addi %c0_i32_7, %9 : i32
    %c1_i32_8 = arith.constant 1 : i32
    %11 = scf.for %arg7 = %c0_i32_7 to %10 step %c1_i32_8 iter_args(%arg8 = %8) -> (vector<1x256xf32>)  : i32 {
      %13 = arith.index_cast %arg7 : i32 to index
      %c0_11 = arith.constant 0 : index
      %14 = vector.load %arg1[%13, %c0_11] : memref<8x768xf32, #tpu.memory_space<vmem>>, vector<1x768xf32>
      %15 = arith.truncf %arg8 : vector<1x256xf32> to vector<1x256xbf16>
      %cst = arith.constant dense<0.000000e+00> : vector<1x768xf32>
      %16 = tpu.matmul %15, %3, %cst {dimension_numbers = #tpu.dot_dimension_numbers<[1], [0], [0], [1], [0, 0, 1, 1], [], []>} : vector<1x256xbf16>, vector<256x768xbf16>, vector<1x768xf32> -> vector<1x768xf32>
      %17 = arith.addf %16, %4 : vector<1x768xf32>
      %18 = vector.extract_strided_slice %14 {offsets = [0, 0], sizes = [1, 256], strides = [1, 1]} : vector<1x768xf32> to vector<1x256xf32>
      %19 = vector.extract_strided_slice %14 {offsets = [0, 256], sizes = [1, 256], strides = [1, 1]} : vector<1x768xf32> to vector<1x256xf32>
      %20 = vector.extract_strided_slice %14 {offsets = [0, 512], sizes = [1, 256], strides = [1, 1]} : vector<1x768xf32> to vector<1x256xf32>
      %21 = vector.extract_strided_slice %17 {offsets = [0, 0], sizes = [1, 256], strides = [1, 1]} : vector<1x768xf32> to vector<1x256xf32>
      %22 = vector.extract_strided_slice %17 {offsets = [0, 256], sizes = [1, 256], strides = [1, 1]} : vector<1x768xf32> to vector<1x256xf32>
      %23 = vector.extract_strided_slice %17 {offsets = [0, 512], sizes = [1, 256], strides = [1, 1]} : vector<1x768xf32> to vector<1x256xf32>
      %24 = arith.addf %18, %21 : vector<1x256xf32>
      %25 = arith.negf %24 : vector<1x256xf32>
      %26 = math.exp %25 : vector<1x256xf32>
      %cst_12 = arith.constant 1.000000e+00 : f32
      %27 = vector.broadcast %cst_12 : f32 to vector<1x256xf32>
      %28 = arith.addf %27, %26 : vector<1x256xf32>
      %29 = arith.divf %27, %28 : vector<1x256xf32>
      %30 = arith.addf %19, %22 : vector<1x256xf32>
      %31 = arith.negf %30 : vector<1x256xf32>
      %32 = math.exp %31 : vector<1x256xf32>
      %cst_13 = arith.constant 1.000000e+00 : f32
      %33 = vector.broadcast %cst_13 : f32 to vector<1x256xf32>
      %34 = arith.addf %33, %32 : vector<1x256xf32>
      %35 = arith.divf %33, %34 : vector<1x256xf32>
      %36 = arith.mulf %29, %23 : vector<1x256xf32>
      %37 = arith.addf %20, %36 : vector<1x256xf32>
      %38 = math.tanh %37 : vector<1x256xf32>
      %cst_14 = arith.constant 1.000000e+00 : f32
      %39 = vector.broadcast %cst_14 : f32 to vector<1x256xf32>
      %40 = arith.subf %39, %35 : vector<1x256xf32>
      %41 = arith.mulf %40, %38 : vector<1x256xf32>
      %42 = arith.mulf %35, %arg8 : vector<1x256xf32>
      %43 = arith.addf %41, %42 : vector<1x256xf32>
      %cst_15 = arith.constant 0.000000e+00 : f32
      %44 = vector.broadcast %cst_15 : f32 to vector<1x256xf32>
      %45 = arith.maximumf %43, %44 : vector<1x256xf32>
      %46 = arith.index_cast %arg7 : i32 to index
      %c0_16 = arith.constant 0 : index
      %47 = vector.load %arg5[%46, %c0_16] : memref<8x256xf32, #tpu.memory_space<vmem>>, vector<1x256xf32>
      tpu.vector_store %arg5[%46, %c0_16], %45 {strides = array<i32>} : memref<8x256xf32, #tpu.memory_space<vmem>>, vector<1x256xf32>,
      scf.yield %43 : vector<1x256xf32>
    }
    %c0_9 = arith.constant 0 : index
    %c0_10 = arith.constant 0 : index
    %12 = vector.load %arg6[%c0_9, %c0_10] : memref<1x256xf32, #tpu.memory_space<vmem>>, vector<1x256xf32>
    tpu.vector_store %arg6[%c0_9, %c0_10], %11 {strides = array<i32>} : memref<1x256xf32, #tpu.memory_space<vmem>>, vector<1x256xf32>,
    return
  }
  func.func @transform_0(%arg0: i32) -> (i32, i32) {
    %c0_i32 = arith.constant 0 : i32
    %c0_i32_0 = arith.constant 0 : i32
    return %arg0, %c0_i32 : i32, i32
  }
  func.func @transform_1(%arg0: i32) -> (i32, i32) {
    %c0_i32 = arith.constant 0 : i32
    %c0_i32_0 = arith.constant 0 : i32
    %c0_i32_1 = arith.constant 0 : i32
    return %c0_i32, %c0_i32_0 : i32, i32
  }
  func.func @transform_2(%arg0: i32) -> (i32, i32) {
    %c0_i32 = arith.constant 0 : i32
    %c0_i32_0 = arith.constant 0 : i32
    %c0_i32_1 = arith.constant 0 : i32
    return %c0_i32, %c0_i32_0 : i32, i32
  }
  func.func @transform_3(%arg0: i32) -> (i32, i32) {
    %c0_i32 = arith.constant 0 : i32
    %c0_i32_0 = arith.constant 0 : i32
    %c0_i32_1 = arith.constant 0 : i32
    return %c0_i32, %c0_i32_0 : i32, i32
  }
  func.func @transform_4(%arg0: i32) -> (i32, i32) {
    %c0_i32 = arith.constant 0 : i32
    %c0_i32_0 = arith.constant 0 : i32
    return %arg0, %c0_i32 : i32, i32
  }
  func.func @transform_5(%arg0: i32) -> (i32, i32) {
    %c0_i32 = arith.constant 0 : i32
    %c0_i32_0 = arith.constant 0 : i32
    %c0_i32_1 = arith.constant 0 : i32
    return %c0_i32, %c0_i32_0 : i32, i32
  }
}

</mosaic_0001>

<bundles_post_ra>
// kernel: _encoder_rnn_seq.1
= control target key start
LH: loop header
LB: loop body
LE: loop exit
PB: predicated region body
PF: predicated region fallthrough
CT: control target
= control target key end

     0   :  { %11 = vsyncpa [#allocation3], 0  ;;  %v1893_v1 = vlaneseq  ;;  %v2001_v6 = vmov 0  ;;  %s1622_s6 = smov 0   ;;  %s1887_s0 = inlined_call_operand.vmem [shape: f32[8,768], index: 0, kind: input, shape index: {}]   ;;  %s1888_s1 = inlined_call_operand.vmem [shape: f32[1,256], index: 1, kind: input, shape index: {}]   ;;  %s1889_s2 = inlined_call_operand.vmem [shape: bf16[256,768], index: 2, kind: input, shape index: {}]   ;;  %s1890_s3 = inlined_call_operand.vmem [shape: f32[1,768], index: 3, kind: input, shape index: {}]   ;;  %s1891_s4 = inlined_call_operand.vmem [shape: f32[8,256], index: 4, kind: output, shape index: {0}]   ;;  %s1892_s5 = inlined_call_operand.hbm [shape: f32[1,256], index: 5, kind: output, shape index: {1}]  }
   0x1   :  { %v24_v0 = vld [vmem:[%s1888_s1] sm:$0x3]  ;;  %v1136_v3 = vld [vmem:[%s1889_s2 + $0x8] sm:$0xff]  ;;  %v1141_v4 = vld [vmem:[%s1889_s2 + $0x10] sm:$0xff] }
   0x2   :  { %v1131_v2 = vld [vmem:[%s1889_s2] sm:$0xff]  ;;  %1998 = vst [vmem:[#allocation6_spill] sm:$0xff] %v1136_v3  ;;  %1999 = vst [vmem:[#allocation7_spill] sm:$0xff] %v1141_v4  ;;  %v1146_v5 = vld [vmem:[%s1889_s2 + $0x18] sm:$0xff]  ;;  %vm1149_vm0 = vcmp.lt.s32.totalorder %v1893_v1, 256 }
   0x3   :  { %1997 = vst [vmem:[#allocation5_spill] sm:$0xff] %v1131_v2  ;;  %2000 = vst [vmem:[#allocation8_spill] sm:$0xff] %v1146_v5  ;;  %v2002_v6 = vsel %vm1149_vm0, 4294967295, %v2001_v6  ;;  %v1156_v7 = vld [vmem:[%s1889_s2 + $0x20] sm:$0xff]  ;;  %v1161_v8 = vld [vmem:[%s1889_s2 + $0x28] sm:$0xff] }
   0x4   :  { %2003 = vst [vmem:[#allocation9_spill] sm:$0xff] %v2002_v6  ;;  %2004 = vst [vmem:[#allocation10_spill] sm:$0xff] %v1156_v7  ;;  %v1166_v9 = vld [vmem:[%s1889_s2 + $0x30] sm:$0xff]  ;;  %v1173_v10 = vld [vmem:[%s1889_s2 + $0x38] sm:$0xff] }
   0x5   :  { %2005 = vst [vmem:[#allocation11_spill] sm:$0xff] %v1161_v8  ;;  %2006 = vst [vmem:[#allocation12_spill] sm:$0xff] %v1166_v9  ;;  %v1178_v11 = vld [vmem:[%s1889_s2 + $0x40] sm:$0xff]  ;;  %v1183_v12 = vld [vmem:[%s1889_s2 + $0x48] sm:$0xff] }
   0x6   :  { %29 = vst.msk [vmem:[#allocation2] sm:$0x3] %vm1149_vm0, %v24_v0  ;;  %2007 = vst [vmem:[#allocation13_spill] sm:$0xff] %v1173_v10  ;;  %v1188_v13 = vld [vmem:[%s1889_s2 + $0x50] sm:$0xff]  ;;  %v1193_v14 = vld [vmem:[%s1889_s2 + $0x58] sm:$0xff] }
   0x7   :  { %2008 = vst [vmem:[#allocation14_spill] sm:$0xff] %v1178_v11  ;;  %2009 = vst [vmem:[#allocation15_spill] sm:$0xff] %v1183_v12  ;;  %v1198_v15 = vld [vmem:[%s1889_s2 + $0x60] sm:$0xff]  ;;  %v1203_v16 = vld [vmem:[%s1889_s2 + $0x68] sm:$0xff] }
   0x8   :  { %2010 = vst [vmem:[#allocation16_spill] sm:$0xff] %v1188_v13  ;;  %2011 = vst [vmem:[#allocation17_spill] sm:$0xff] %v1193_v14  ;;  %v1208_v17 = vld [vmem:[%s1889_s2 + $0x70] sm:$0xff]  ;;  %v1213_v18 = vld [vmem:[%s1889_s2 + $0x78] sm:$0xff] }
   0x9   :  { %2012 = vst [vmem:[#allocation18_spill] sm:$0xff] %v1198_v15  ;;  %2013 = vst [vmem:[#allocation19_spill] sm:$0xff] %v1203_v16  ;;  %v1218_v19 = vld [vmem:[%s1889_s2 + $0x80] sm:$0xff]  ;;  %v1223_v20 = vld [vmem:[%s1889_s2 + $0x88] sm:$0xff] }
   0xa   :  { %2014 = vst [vmem:[#allocation20_spill] sm:$0xff] %v1208_v17  ;;  %2015 = vst [vmem:[#allocation21_spill] sm:$0xff] %v1213_v18  ;;  %v1228_v21 = vld [vmem:[%s1889_s2 + $0x90] sm:$0xff]  ;;  %v1233_v22 = vld [vmem:[%s1889_s2 + $0x98] sm:$0xff] }
   0xb   :  { %2016 = vst [vmem:[#allocation22_spill] sm:$0xff] %v1218_v19  ;;  %2017 = vst [vmem:[#allocation23_spill] sm:$0xff] %v1223_v20  ;;  %v1238_v23 = vld [vmem:[%s1889_s2 + $0xa0] sm:$0xff]  ;;  %v1243_v24 = vld [vmem:[%s1889_s2 + $0xa8] sm:$0xff] }
   0xc   :  { %2018 = vst [vmem:[#allocation24_spill] sm:$0xff] %v1228_v21  ;;  %2019 = vst [vmem:[#allocation25_spill] sm:$0xff] %v1233_v22  ;;  %v1248_v25 = vld [vmem:[%s1889_s2 + $0xb0] sm:$0xff]  ;;  %v1253_v26 = vld [vmem:[%s1889_s2 + $0xb8] sm:$0xff] }
   0xd   :  { %2020 = vst [vmem:[#allocation26_spill] sm:$0xff] %v1238_v23  ;;  %2021 = vst [vmem:[#allocation27_spill] sm:$0xff] %v1243_v24  ;;  %v1258_v27 = vld [vmem:[%s1889_s2 + $0xc0] sm:$0xff]  ;;  %v1263_v28 = vld [vmem:[%s1889_s2 + $0xc8] sm:$0xff] }
   0xe   :  { %2022 = vst [vmem:[#allocation28_spill] sm:$0xff] %v1253_v26  ;;  %v1268_v29 = vld [vmem:[%s1889_s2 + $0xd0] sm:$0xff]  ;;  %v1273_v30 = vld [vmem:[%s1889_s2 + $0xd8] sm:$0xff]  ;;  %v1278_v31 = vld [vmem:[%s1889_s2 + $0xe0] sm:$0xff] }
   0xf   :  { %2023 = vst [vmem:[#allocation29_spill] sm:$0xff] %v1268_v29  ;;  %v1283_v32 = vld [vmem:[%s1889_s2 + $0xe8] sm:$0xff]  ;;  %v1288_v33 = vld [vmem:[%s1889_s2 + $0xf0] sm:$0xff]  ;;  %v1293_v34 = vld [vmem:[%s1889_s2 + $0xf8] sm:$0xff] }
  0x10   :  { %2024 = vst [vmem:[#allocation30_spill] sm:$0xff] %v1283_v32  ;;  %v1298_v35 = vld [vmem:[%s1889_s2 + $0x100] sm:$0xff]  ;;  %v1303_v36 = vld [vmem:[%s1889_s2 + $0x108] sm:$0xff]  ;;  %v1308_v37 = vld [vmem:[%s1889_s2 + $0x110] sm:$0xff] }
  0x11   :  { %2025 = vst [vmem:[#allocation31_spill] sm:$0xff] %v1298_v35  ;;  %v1313_v38 = vld [vmem:[%s1889_s2 + $0x118] sm:$0xff]  ;;  %v1318_v39 = vld [vmem:[%s1889_s2 + $0x120] sm:$0xff]  ;;  %v1323_v40 = vld [vmem:[%s1889_s2 + $0x128] sm:$0xff] }
  0x12   :  { %2026 = vst [vmem:[#allocation32_spill] sm:$0xff] %v1313_v38  ;;  %2027 = vst [vmem:[#allocation33_spill] sm:$0xff] %v1318_v39  ;;  %v1328_v41 = vld [vmem:[%s1889_s2 + $0x130] sm:$0xff]  ;;  %v1333_v42 = vld [vmem:[%s1889_s2 + $0x138] sm:$0xff] }
  0x13   :  { %2028 = vst [vmem:[#allocation34_spill] sm:$0xff] %v1328_v41  ;;  %2029 = vst [vmem:[#allocation35_spill] sm:$0xff] %v1333_v42  ;;  %v1338_v43 = vld [vmem:[%s1889_s2 + $0x140] sm:$0xff]  ;;  %v1343_v44 = vld [vmem:[%s1889_s2 + $0x148] sm:$0xff] }
  0x14   :  { %2030 = vst [vmem:[#allocation36_spill] sm:$0xff] %v1343_v44  ;;  %v1348_v45 = vld [vmem:[%s1889_s2 + $0x150] sm:$0xff]  ;;  %v1353_v46 = vld [vmem:[%s1889_s2 + $0x158] sm:$0xff]  ;;  %v1358_v47 = vld [vmem:[%s1889_s2 + $0x160] sm:$0xff] }
  0x15   :  { %2031 = vst [vmem:[#allocation37_spill] sm:$0xff] %v1348_v45  ;;  %2032 = vst [vmem:[#allocation38_spill] sm:$0xff] %v1353_v46  ;;  %v1363_v48 = vld [vmem:[%s1889_s2 + $0x168] sm:$0xff]  ;;  %v1368_v49 = vld [vmem:[%s1889_s2 + $0x170] sm:$0xff] }
  0x16   :  { %2033 = vst [vmem:[#allocation39_spill] sm:$0xff] %v1358_v47  ;;  %v1373_v50 = vld [vmem:[%s1889_s2 + $0x178] sm:$0xff]  ;;  %v1378_v51 = vld [vmem:[%s1889_s2 + $0x180] sm:$0xff]  ;;  %v1383_v52 = vld [vmem:[%s1889_s2 + $0x188] sm:$0xff] }
  0x17   :  { %2034 = vst [vmem:[#allocation40_spill] sm:$0xff] %v1373_v50  ;;  %2035 = vst [vmem:[#allocation41_spill] sm:$0xff] %v1378_v51  ;;  %v1388_v53 = vld [vmem:[%s1889_s2 + $0x190] sm:$0xff]  ;;  %v1393_v54 = vld [vmem:[%s1889_s2 + $0x198] sm:$0xff] }
  0x18   :  { %2036 = vst [vmem:[#allocation42_spill] sm:$0xff] %v1383_v52  ;;  %2037 = vst [vmem:[#allocation43_spill] sm:$0xff] %v1388_v53  ;;  %v1398_v55 = vld [vmem:[%s1889_s2 + $0x1a0] sm:$0xff]  ;;  %v1403_v56 = vld [vmem:[%s1889_s2 + $0x1a8] sm:$0xff] }
  0x19   :  { %2038 = vst [vmem:[#allocation44_spill] sm:$0xff] %v1393_v54  ;;  %2039 = vst [vmem:[#allocation45_spill] sm:$0xff] %v1398_v55  ;;  %v1408_v57 = vld [vmem:[%s1889_s2 + $0x1b0] sm:$0xff]  ;;  %v1413_v58 = vld [vmem:[%s1889_s2 + $0x1b8] sm:$0xff] }
  0x1a   :  { %2040 = vst [vmem:[#allocation46_spill] sm:$0xff] %v1403_v56  ;;  %2041 = vst [vmem:[#allocation47_spill] sm:$0xff] %v1413_v58  ;;  %v1418_v59 = vld [vmem:[%s1889_s2 + $0x1c0] sm:$0xff]  ;;  %v1423_v60 = vld [vmem:[%s1889_s2 + $0x1c8] sm:$0xff] }
  0x1b   :  { %2042 = vst [vmem:[#allocation48_spill] sm:$0xff] %v1418_v59  ;;  %v1428_v61 = vld [vmem:[%s1889_s2 + $0x1d0] sm:$0xff]  ;;  %v1433_v62 = vld [vmem:[%s1889_s2 + $0x1d8] sm:$0xff]  ;;  %v1438_v63 = vld [vmem:[%s1889_s2 + $0x1e0] sm:$0xff] }
  0x1c   :  { %2043 = vst [vmem:[#allocation49_spill] sm:$0xff] %v1428_v61  ;;  %2044 = vst [vmem:[#allocation50_spill] sm:$0xff] %v1433_v62  ;;  %v1443_v0 = vld [vmem:[%s1889_s2 + $0x1e8] sm:$0xff]  ;;  %v1448_v1 = vld [vmem:[%s1889_s2 + $0x1f0] sm:$0xff] }
  0x1d   :  { %2045 = vst [vmem:[#allocation51_spill] sm:$0xff] %v1443_v0  ;;  %2046 = vst [vmem:[#allocation52_spill] sm:$0xff] %v1448_v1  ;;  %v1453_v6 = vld [vmem:[%s1889_s2 + $0x1f8] sm:$0xff]  ;;  %v1458_v53 = vld [vmem:[%s1889_s2 + $0x200] sm:$0xff] }
  0x1e   :  { %2047 = vst [vmem:[#allocation53_spill] sm:$0xff] %v1453_v6  ;;  %2048 = vst [vmem:[#allocation54_spill] sm:$0xff] %v1458_v53  ;;  %v1463_v56 = vld [vmem:[%s1889_s2 + $0x208] sm:$0xff]  ;;  %v1468_v59 = vld [vmem:[%s1889_s2 + $0x210] sm:$0xff] }
  0x1f   :  { %2049 = vst [vmem:[#allocation55_spill] sm:$0xff] %v1463_v56  ;;  %v1473_v62 = vld [vmem:[%s1889_s2 + $0x218] sm:$0xff]  ;;  %v1478_v1 = vld [vmem:[%s1889_s2 + $0x220] sm:$0xff]  ;;  %v1483_v4 = vld [vmem:[%s1889_s2 + $0x228] sm:$0xff] }
  0x20   :  { %2050 = vst [vmem:[#allocation56_spill] sm:$0xff] %v1478_v1  ;;  %2051 = vst [vmem:[#allocation57_spill] sm:$0xff] %v1483_v4  ;;  %v1488_v56 = vld [vmem:[%s1889_s2 + $0x230] sm:$0xff]  ;;  %v1493_v8 = vld [vmem:[%s1889_s2 + $0x238] sm:$0xff] }
  0x21   :  { %2052 = vst [vmem:[#allocation58_spill] sm:$0xff] %v1493_v8  ;;  %v1498_v11 = vld [vmem:[%s1889_s2 + $0x240] sm:$0xff]  ;;  %v1503_v1 = vld [vmem:[%s1889_s2 + $0x248] sm:$0xff]  ;;  %v1508_v14 = vld [vmem:[%s1889_s2 + $0x250] sm:$0xff] }
  0x22   :  { %2053 = vst [vmem:[#allocation59_spill] sm:$0xff] %v1498_v11  ;;  %2054 = vst [vmem:[#allocation60_spill] sm:$0xff] %v1503_v1  ;;  %v1513_v17 = vld [vmem:[%s1889_s2 + $0x258] sm:$0xff]  ;;  %v1518_v8 = vld [vmem:[%s1889_s2 + $0x260] sm:$0xff] }
  0x23   :  { %2055 = vst [vmem:[#allocation61_spill] sm:$0xff] %v1508_v14  ;;  %2056 = vst [vmem:[#allocation62_spill] sm:$0xff] %v1513_v17  ;;  %v1523_v20 = vld [vmem:[%s1889_s2 + $0x268] sm:$0xff]  ;;  %v1528_v23 = vld [vmem:[%s1889_s2 + $0x270] sm:$0xff] }
  0x24   :  { %2057 = vst [vmem:[#allocation63_spill] sm:$0xff] %v1518_v8  ;;  %2058 = vst [vmem:[#allocation64_spill] sm:$0xff] %v1523_v20  ;;  %v1533_v14 = vld [vmem:[%s1889_s2 + $0x278] sm:$0xff]  ;;  %v1538_v26 = vld [vmem:[%s1889_s2 + $0x280] sm:$0xff] }
  0x25   :  { %2059 = vst [vmem:[#allocation65_spill] sm:$0xff] %v1528_v23  ;;  %2060 = vst [vmem:[#allocation66_spill] sm:$0xff] %v1533_v14  ;;  %v1543_v29 = vld [vmem:[%s1889_s2 + $0x288] sm:$0xff]  ;;  %v1548_v20 = vld [vmem:[%s1889_s2 + $0x290] sm:$0xff] }
  0x26   :  { %2061 = vst [vmem:[#allocation67_spill] sm:$0xff] %v1538_v26  ;;  %2062 = vst [vmem:[#allocation68_spill] sm:$0xff] %v1548_v20  ;;  %v1553_v32 = vld [vmem:[%s1889_s2 + $0x298] sm:$0xff]  ;;  %v1558_v35 = vld [vmem:[%s1889_s2 + $0x2a0] sm:$0xff] }
  0x27   :  { %2063 = vst [vmem:[#allocation69_spill] sm:$0xff] %v1553_v32  ;;  %v1563_v26 = vld [vmem:[%s1889_s2 + $0x2a8] sm:$0xff]  ;;  %v1568_v38 = vld [vmem:[%s1889_s2 + $0x2b0] sm:$0xff]  ;;  %v1573_v41 = vld [vmem:[%s1889_s2 + $0x2b8] sm:$0xff] }
  0x28   :  { %2064 = vst [vmem:[#allocation70_spill] sm:$0xff] %v1568_v38  ;;  %v1578_v32 = vld [vmem:[%s1889_s2 + $0x2c0] sm:$0xff]  ;;  %v1583_v44 = vld [vmem:[%s1889_s2 + $0x2c8] sm:$0xff]  ;;  %v1588_v52 = vld [vmem:[%s1889_s2 + $0x2d0] sm:$0xff] }
  0x29   :  { %2065 = vst [vmem:[#allocation71_spill] sm:$0xff] %v1583_v44  ;;  %v1593_v38 = vld [vmem:[%s1889_s2 + $0x2d8] sm:$0xff]  ;;  %v1598_v55 = vld [vmem:[%s1889_s2 + $0x2e0] sm:$0xff]  ;;  %v1603_v47 = vld [vmem:[%s1889_s2 + $0x2e8] sm:$0xff] }
  0x2a   :  { %2066 = vst [vmem:[#allocation72_spill] sm:$0xff] %v1598_v55  ;;  %v1608_v44 = vld [vmem:[%s1889_s2 + $0x2f0] sm:$0xff]  ;;  %v1613_v50 = vld [vmem:[%s1889_s2 + $0x2f8] sm:$0xff]  ;;  %v1618_v58 = vld [vmem:[%s1890_s3] sm:$0x3f] }
  0x2b   :  { %2067 = vst [vmem:[#allocation73_spill] sm:$0xff] %v1613_v50  ;;  %2068 = vst [vmem:[#allocation74_spill] sm:$0xff] %v1618_v58  ;;  %v131_v55 = vld [vmem:[#allocation2] sm:$0x3]  }
  0x2c LB: > { %v2069_v24 = vld [vmem:[#allocation27_spill] sm:$0xff]  ;;  %v2070_v23 = vld [vmem:[#allocation65_spill] sm:$0xff]  ;;  %v2073_v19 = vld [vmem:[#allocation22_spill] sm:$0xff]  ;;  %v957_v54 = vcombine.high %v1288_v33, %v1303_v36  ;;  %s139_s2 = sshra.s32 %s1091_s6, 3  ;;  %s142_s7 = sand.u32 7, %s1091_s6  ;;  %s1091_s6 = sphi %s1622_s6, %s135_s6   ;;  %v1087_v55 = vphi %v131_v55, %v2142_v55  }
  0x2d   : > { %v2071_v22 = vld [vmem:[#allocation25_spill] sm:$0xff]  ;;  %v2072_v20 = vld [vmem:[#allocation68_spill] sm:$0xff]  ;;  %v2075_v17 = vld [vmem:[#allocation62_spill] sm:$0xff]  ;;  %s925_s3 = smul.u32 48, %s139_s2  ;;  %s1026_s12 = sshll.u32 %s139_s2, 4 }
  0x2e   : > { %v2074_v18 = vld [vmem:[#allocation21_spill] sm:$0xff]  ;;  %v2076_v16 = vld [vmem:[#allocation19_spill] sm:$0xff]  ;;  %v2077_v15 = vld [vmem:[#allocation18_spill] sm:$0xff]  ;;  %s884_s13 = sadd.s32 %s1026_s12, %s142_s7  ;;  %s135_s6 = sadd.s32 1, %s1091_s6  }
  0x2f   : > { %v2078_v14 = vld [vmem:[#allocation66_spill] sm:$0xff]  ;;  %v2079_v13 = vld [vmem:[#allocation16_spill] sm:$0xff]  ;;  %v2080_v12 = vld [vmem:[#allocation15_spill] sm:$0xff]  ;;  %s145_s8 = sadd.s32 %s925_s3, %s142_s7  ;;  %s885_s16 = scalar_lea.vmem %s1891_s4, %s884_s13 }
  0x30   : > { %v2081_v11 = vld [vmem:[#allocation59_spill] sm:$0xff]  ;;  %v2082_v10 = vld [vmem:[#allocation13_spill] sm:$0xff]  ;;  %v2083_v9 = vld [vmem:[#allocation12_spill] sm:$0xff]  ;;  %s146_s11 = scalar_lea.vmem %s1887_s0, %s145_s8  ;;  %p134_p0 = scmp.ge.s32.totalorder %s135_s6, 1 }
  0x31   : > { %v2084_v8 = vld [vmem:[#allocation63_spill] sm:$0xff]  ;;  %v2085_v7 = vld [vmem:[#allocation10_spill] sm:$0xff]  ;;  %v2086_v6 = vld [vmem:[#allocation53_spill] sm:$0xff]  ;;  %s1094_s17 = smov (%p134_p0), [#allocation2]  }
  0x32   : > { %v2087_v5 = vld [vmem:[#allocation8_spill] sm:$0xff]  ;;  %v2088_v4 = vld [vmem:[#allocation57_spill] sm:$0xff]  ;;  %v2089_v3 = vld [vmem:[#allocation6_spill] sm:$0xff]  ;;  %s901_s18 = sshll.u32 (%p134_p0), %s1094_s17, 4  ;;  %s902_s18 = int_to_ptr.vmem [resolvable:$true] %s901_s18 }
  0x33   : > { %v2090_v2 = vld [vmem:[#allocation5_spill] sm:$0xff]  ;;  %v2091_v1 = vld [vmem:[#allocation60_spill] sm:$0xff]  ;;  %v2093_v46 = vld [vmem:[#allocation38_spill] sm:$0xff]  ;;  %s1055_s19 = scalar_lea.vmem (%p134_p0), %s902_s18, 32  ;;  %p1060_p2 = scmp.lt.s32.totalorder (%p134_p0), %s902_s18, %s902_s18 }
  0x34   : > { %v2092_v21 = vld [vmem:[#allocation24_spill] sm:$0xff]  ;;  %v2094_v42 = vld [vmem:[#allocation35_spill] sm:$0xff]  ;;  %v2095_v39 = vld [vmem:[#allocation33_spill] sm:$0xff]  ;;  %v971_v0 = vcombine.high %v2093_v46, %v1368_v49  ;;  %v970_v53 = vcombine.low %v2093_v46, %v1368_v49  ;;  %p1056_p1 = scmp.ne.s32.totalorder (%p134_p0), %s902_s18, %s1055_s19  ;;  %p1061_p3 = scmp.lt.s32.totalorder (%p134_p0), %s1055_s19, %s1055_s19 }
  0x35   : > { %v2096_v45 = vld [vmem:[#allocation37_spill] sm:$0xff]  ;;  %v963_v58 = vcombine.high %v2095_v39, %v2094_v42  ;;  %v962_v51 = vcombine.low %v2095_v39, %v2094_v42  ;;  %v959_v39 = vcombine.high %v1293_v34, %v1308_v37  ;;  %v2097_v42 = vlaneseq }
  0x36   : > { %v969_v50 = vcombine.high %v2096_v45, %v1363_v48  ;;  %v968_v61 = vcombine.low %v2096_v45, %v1363_v48  ;;  %v965_v45 = vcombine.high %v1323_v40, %v1338_v43  ;;  %715 = vmatprep.subr.bf16.mxu1 %v971_v0  ;;  %p1062_p4 = por (%p134_p0), %p1061_p3, %p1060_p2 }
  0x37   : > { %716 = vmatpush1.bf16.msra.mxu1 %v970_v53  ;;  %v1657_v46 = vshrl.u32 %v2097_v42, 7  ;;  %v958_v53 = vcombine.low %v1293_v34, %v1308_v37 }
  0x38   : > { %674 = vmatprep.subr.bf16.mxu0 %v969_v50  ;;  %v956_v50 = vcombine.low %v1288_v33, %v1303_v36  ;;  %717 = vmatprep.subr.bf16.mxu1 %v965_v45  ;;  %v953_v45 = vcombine.high %v1263_v28, %v1278_v31  ;;  %p1063_p5 = pnand (%p134_p0), %p1062_p4, %p1056_p1 }
  0x39   : > { %675 = vmatpush1.bf16.msra.mxu0 %v968_v61  ;;  %v964_v61 = vcombine.low %v1323_v40, %v1338_v43  ;;  %v1941_v0 = vsub.s32 1, %v1657_v46 }
  0x3a   : > { %676 = vmatprep.subr.bf16.mxu0 %v963_v58  ;;  %v951_v58 = vcombine.high %v1258_v27, %v1273_v30 }
  0x3b   : > { %718 = vmatpush1.bf16.msra.mxu1 %v964_v61  ;;  %v158_v42 = vrot.slane %v1087_v55, %v1941_v0  ;;  %v947_v61 = vcombine.high %v2071_v22, %v1248_v25  ;;  %v2099_v0 = vld [vmem:[#allocation51_spill] sm:$0xff] }
  0x3c   : > { %719 = vmatprep.subr.bf16.mxu1 %v959_v39  ;;  %v952_v39 = vcombine.low %v1263_v28, %v1278_v31 }
  0x3d   : > { %677 = vmatpush1.bf16.msra.mxu0 %v962_v51  ;;  %v950_v51 = vcombine.low %v1258_v27, %v1273_v30 }
  0x3e   : > { %678 = vmatprep.subr.bf16.mxu0 %v957_v54  ;;  %v945_v54 = vcombine.high %v2092_v21, %v2069_v24 }
  0x3f   : > { %720 = vmatpush1.bf16.msra.mxu1 %v958_v53  ;;  %v946_v53 = vcombine.low %v2071_v22, %v1248_v25 }
  0x40   : > { %721 = vmatprep.subr.bf16.mxu1 %v953_v45  ;;  %v941_v45 = vcombine.high %v2076_v16, %v2073_v19 }
  0x41   : > { %679 = vmatpush1.bf16.msra.mxu0 %v956_v50  ;;  %v944_v50 = vcombine.low %v2092_v21, %v2069_v24  ;;  %v938_v21 = vcombine.low %v2077_v15, %v2074_v18 }
  0x42   : > { %680 = vmatprep.subr.bf16.mxu0 %v951_v58  ;;  %v939_v58 = vcombine.high %v2077_v15, %v2074_v18 }
  0x43   : > { %722 = vmatpush1.bf16.msra.mxu1 %v952_v39  ;;  %v935_v39 = vcombine.high %v2082_v10, %v2079_v13 }
  0x44   : > { %723 = vmatprep.subr.bf16.mxu1 %v947_v61  ;;  %v926_v61 = vcombine.low %v2090_v2, %v2087_v5 }
  0x45   : > { %681 = vmatpush1.bf16.msra.mxu0 %v950_v51  ;;  %v1677_v51 = vpack.c.bf16 %v158_v42, %v158_v42  ;;  %v927_v42 = vcombine.high %v2090_v2, %v2087_v5  ;;  %v2100_v2 = vld [vmem:[#allocation44_spill] sm:$0xff] }
  0x46   : > { %682 = vmatprep.subr.bf16.mxu0 %v945_v54  ;;  %v933_v54 = vcombine.high %v2083_v9, %v2080_v12 }
  0x47   : > { %706 = vmatprep.mubr.bf16.mxu0 %v1677_v51  ;;  %747 = vmatprep.mubr.bf16.mxu1 %v1677_v51 }
  0x48   : > { %724 = vmatpush1.bf16.msra.mxu1 %v946_v53  ;;  %v929_v53 = vcombine.high %v2089_v3, %v2085_v7 }
  0x49   : > { %683 = vmatpush1.bf16.msra.mxu0 %v944_v50  ;;  %v932_v50 = vcombine.low %v2083_v9, %v2080_v12  ;;  %725 = vmatprep.subr.bf16.mxu1 %v941_v45  ;;  %v1016_v45 = vcombine.low %v1588_v52, %v1603_v47  ;;  %v2127_v12 = vld [vmem:[#allocation67_spill] sm:$0xff] }
  0x4a   : > { %684 = vmatprep.subr.bf16.mxu0 %v939_v58  ;;  %v940_v58 = vcombine.low %v2076_v16, %v2073_v19  ;;  %v147_v16 = vld [vmem:[%s146_s11] ss:$8 sm:$0xf] }
  0x4c   : > { %726 = vmatpush1.bf16.msra.mxu1 %v940_v58  ;;  %v1019_v58 = vcombine.high %v1593_v38, %v1608_v44 }
  0x4d   : > { %685 = vmatpush1.bf16.msra.mxu0 %v938_v21  ;;  %v1017_v21 = vcombine.high %v1588_v52, %v1603_v47  ;;  %727 = vmatprep.subr.bf16.mxu1 %v935_v39  ;;  %v1010_v39 = vcombine.low %v1558_v35, %v1573_v41 }
  0x4e   : > { %686 = vmatprep.subr.bf16.mxu0 %v933_v54  ;;  %v934_v54 = vcombine.low %v2082_v10, %v2079_v13  ;;  %v2131_v13 = vld [vmem:[#allocation56_spill] sm:$0xff] }
  0x50   : > { %728 = vmatpush1.bf16.msra.mxu1 %v934_v54  ;;  %v1013_v54 = vcombine.high %v1563_v26, %v1578_v32 }
  0x51   : > { %687 = vmatpush1.bf16.msra.mxu0 %v932_v50  ;;  %v1011_v50 = vcombine.high %v1558_v35, %v1573_v41  ;;  %729 = vmatprep.subr.bf16.mxu1 %v929_v53  ;;  %v1004_v53 = vcombine.low %v2070_v23, %v1543_v29 }
  0x52   : > { %688 = vmatprep.subr.bf16.mxu0 %v927_v42  ;;  %v928_v42 = vcombine.low %v2089_v3, %v2085_v7  ;;  %v2105_v7 = vld [vmem:[#allocation39_spill] sm:$0xff] }
  0x54   : > { %730 = vmatpush1.bf16.msra.mxu1 %v928_v42  ;;  %v1007_v42 = vcombine.high %v2078_v14, %v2072_v20 }
  0x55   : > { %689 = vmatpush1.bf16.msra.mxu0 %v926_v61  ;;  %v1005_v61 = vcombine.high %v2070_v23, %v1543_v29  ;;  %731 = vmatprep.subr.bf16.mxu1 %v1019_v58  ;;  %v998_v58 = vcombine.low %v2081_v11, %v2075_v17 }
  0x56   : > { %690 = vmatprep.subr.bf16.mxu0 %v1017_v21  ;;  %v1018_v21 = vcombine.low %v1593_v38, %v1608_v44 }
  0x58   : > { %732 = vmatpush2.bf16.msra.mxu1 %v1018_v21  ;;  %v1001_v21 = vcombine.high %v2091_v1, %v2084_v8 }
  0x59   : > { %691 = vmatpush2.bf16.msra.mxu0 %v1016_v45  ;;  %v999_v45 = vcombine.high %v2081_v11, %v2075_v17  ;;  %733 = vmatprep.subr.bf16.mxu1 %v1013_v54  ;;  %v992_v54 = vcombine.low %v1468_v59, %v2088_v4  ;;  %v2123_v11 = vld [vmem:[#allocation72_spill] sm:$0xff] }
  0x5a   : > { %692 = vmatprep.subr.bf16.mxu0 %v1011_v50  ;;  %v1012_v50 = vcombine.low %v1563_v26, %v1578_v32  ;;  %v148_v17 = vld [vmem:[%s146_s11] ss:$8 sm:$0x30] }
  0x5c   : > { %734 = vmatpush2.bf16.msra.mxu1 %v1012_v50  ;;  %v995_v50 = vcombine.high %v1473_v62, %v1488_v56 }
  0x5d   : > { %693 = vmatpush2.bf16.msra.mxu0 %v1010_v39  ;;  %v993_v39 = vcombine.high %v1468_v59, %v2088_v4  ;;  %735 = vmatprep.subr.bf16.mxu1 %v1007_v42  ;;  %v986_v42 = vcombine.low %v1438_v63, %v2086_v6  ;;  %v2102_v4 = vld [vmem:[#allocation49_spill] sm:$0xff] }
  0x5e   : > { %694 = vmatprep.subr.bf16.mxu0 %v1005_v61  ;;  %v1006_v61 = vcombine.low %v2078_v14, %v2072_v20  ;;  %v2135_v14 = vld [vmem:[#allocation48_spill] sm:$0xff] }
  0x60   : > { %736 = vmatpush2.bf16.msra.mxu1 %v1006_v61  ;;  %v2098_v61 = vld [vmem:[#allocation54_spill] sm:$0xff] }
  0x61   : > { %695 = vmatpush2.bf16.msra.mxu0 %v1004_v53  ;;  %v987_v53 = vcombine.high %v1438_v63, %v2086_v6  ;;  %737 = vmatprep.subr.bf16.mxu1 %v1001_v21  ;;  %v1953_v21 = vsub.s32 0, %v1657_v46 }
  0x62   : > { %696 = vmatprep.subr.bf16.mxu0 %v999_v45  ;;  %v1000_v45 = vcombine.low %v2091_v1, %v2084_v8  ;;  %v989_v1 = vcombine.high %v2099_v0, %v2098_v61 }
  0x63   : > { %v154_v6 = vrot.slane %v1087_v55, %v1953_v21  ;;  %v2108_v21 = vld [vmem:[#allocation36_spill] sm:$0xff] }
  0x64   : > { %738 = vmatpush2.bf16.msra.mxu1 %v1000_v45  ;;  %v988_v45 = vcombine.low %v2099_v0, %v2098_v61  ;;  %v2107_v0 = vld [vmem:[#allocation42_spill] sm:$0xff] }
  0x65   : > { %697 = vmatpush2.bf16.msra.mxu0 %v998_v58  ;;  %v981_v58 = vcombine.high %v1408_v57, %v1423_v60  ;;  %739 = vmatprep.subr.bf16.mxu1 %v995_v50  ;;  %v2103_v50 = vld [vmem:[#allocation47_spill] sm:$0xff]  ;;  %v1773_v10 = vpack.c.bf16 %v154_v6, %v154_v6  ;;  %v2110_v6 = vld [vmem:[#allocation32_spill] sm:$0xff] }
  0x66   : > { %698 = vmatprep.subr.bf16.mxu0 %v993_v39  ;;  %v994_v39 = vcombine.low %v1473_v62, %v1488_v56  ;;  %v983_v5 = vcombine.high %v2103_v50, %v2102_v4 }
  0x68   : > { %740 = vmatpush2.bf16.msra.mxu1 %v994_v39  ;;  %v982_v39 = vcombine.low %v2103_v50, %v2102_v4  ;;  %v2117_v4 = vld [vmem:[#allocation20_spill] sm:$0xff] }
  0x69   : > { %699 = vmatpush2.bf16.msra.mxu0 %v992_v54  ;;  %v980_v54 = vcombine.low %v1408_v57, %v1423_v60  ;;  %741 = vmatprep.subr.bf16.mxu1 %v989_v1  ;;  %v2106_v1 = vld [vmem:[#allocation45_spill] sm:$0xff] }
  0x6a   : > { %700 = vmatprep.subr.bf16.mxu0 %v987_v53  ;;  %v2101_v53 = vld [vmem:[#allocation41_spill] sm:$0xff]  ;;  %v977_v9 = vcombine.high %v2107_v0, %v2106_v1 }
  0x6b   : > { %v975_v3 = vcombine.high %v2101_v53, %v2100_v2 }
  0x6c   : > { %742 = vmatpush2.bf16.msra.mxu1 %v988_v45  ;;  %v976_v45 = vcombine.low %v2107_v0, %v2106_v1  ;;  %v2113_v0 = vld [vmem:[#allocation29_spill] sm:$0xff] }
  0x6d   : > { %701 = vmatpush2.bf16.msra.mxu0 %v986_v42  ;;  %v974_v42 = vcombine.low %v2101_v53, %v2100_v2  ;;  %743 = vmatprep.subr.bf16.mxu1 %v983_v5 }
  0x6e   : > { %702 = vmatprep.subr.bf16.mxu0 %v981_v58  ;;  %v2104_v58 = vld [vmem:[#allocation40_spill] sm:$0xff] }
  0x6f   : > { %v973_v8 = vcombine.high %v2105_v7, %v2104_v58 }
  0x70   : > { %744 = vmatpush2.bf16.msra.mxu1 %v982_v39 }
  0x71   : > { %703 = vmatpush2.bf16.msra.mxu0 %v980_v54  ;;  %v972_v54 = vcombine.low %v2105_v7, %v2104_v58  ;;  %745 = vmatprep.subr.bf16.mxu1 %v977_v9  ;;  %v2112_v9 = vld [vmem:[#allocation30_spill] sm:$0xff] }
  0x72   : > { %704 = vmatprep.subr.bf16.mxu0 %v975_v3  ;;  %v2109_v3 = vld [vmem:[#allocation34_spill] sm:$0xff]  ;;  %v954_v1 = vcombine.low %v2113_v0, %v2112_v9 }
  0x73   : > { %v967_v2 = vcombine.high %v2109_v3, %v2108_v21  ;;  %v966_v5 = vcombine.low %v2109_v3, %v2108_v21  ;;  %v2119_v7 = vld [vmem:[#allocation14_spill] sm:$0xff] }
  0x74   : > { %746 = vmatpush2.bf16.msra.mxu1 %v976_v45 }
  0x75   : > { %705 = vmatpush2.bf16.msra.mxu0 %v974_v42  ;;  %v2111_v42 = vld [vmem:[#allocation31_spill] sm:$0xff] }
  0x76   : > { %756 = vmatprep.subr.bf16.mxu0 %v973_v8  ;;  %v961_v8 = vcombine.high %v2111_v42, %v2110_v6  ;;  %v960_v39 = vcombine.low %v2111_v42, %v2110_v6 }
  0x77   : > { %748 = vmatmul.mubr.bf16.vlgmr.msra.gmra.mxu1 %v1773_v10 }
  0x78   : > { %707 = vmatmul.mubr.bf16.vlgmr.msra.gmra.mxu0 %v1773_v10 }
  0x79   : > { %757 = vmatpush1.bf16.msra.mxu0 %v972_v54  ;;  %788 = vmatprep.mubr.bf16.mxu0 %v1677_v51  ;;  %v955_v54 = vcombine.high %v2113_v0, %v2112_v9  ;;  %v2115_v51 = vld [vmem:[#allocation26_spill] sm:$0xff]  ;;  %v2121_v9 = vld [vmem:[#allocation7_spill] sm:$0xff] }
  0x7a   : > { %758 = vmatprep.subr.bf16.mxu0 %v967_v2  ;;  %v2114_v2 = vld [vmem:[#allocation28_spill] sm:$0xff] }
  0x7b   : > { %v949_v3 = vcombine.high %v2115_v51, %v2114_v2  ;;  %v948_v45 = vcombine.low %v2115_v51, %v2114_v2 }
  0x7d   : > { %759 = vmatpush1.bf16.msra.mxu0 %v966_v5  ;;  %v2116_v5 = vld [vmem:[#allocation23_spill] sm:$0xff] }
  0x7e   : > { %760 = vmatprep.subr.bf16.mxu0 %v961_v8  ;;  %v943_v6 = vcombine.high %v2117_v4, %v2116_v5  ;;  %v942_v8 = vcombine.low %v2117_v4, %v2116_v5  ;;  %v2125_v5 = vld [vmem:[#allocation70_spill] sm:$0xff] }
  0x81   : > { %761 = vmatpush1.bf16.msra.mxu0 %v960_v39  ;;  %v2118_v39 = vld [vmem:[#allocation17_spill] sm:$0xff] }
  0x82   : > { %762 = vmatprep.subr.bf16.mxu0 %v955_v54  ;;  %v937_v0 = vcombine.high %v2119_v7, %v2118_v39  ;;  %v936_v54 = vcombine.low %v2119_v7, %v2118_v39 }
  0x85   : > { %763 = vmatpush1.bf16.msra.mxu0 %v954_v1  ;;  %v2120_v1 = vld [vmem:[#allocation11_spill] sm:$0xff] }
  0x86   : > { %764 = vmatprep.subr.bf16.mxu0 %v949_v3  ;;  %v931_v2 = vcombine.high %v2121_v9, %v2120_v1  ;;  %v930_v3 = vcombine.low %v2121_v9, %v2120_v1  ;;  %v2129_v9 = vld [vmem:[#allocation61_spill] sm:$0xff] }
  0x89   : > { %765 = vmatpush1.bf16.msra.mxu0 %v948_v45  ;;  %v2122_v45 = vld [vmem:[#allocation73_spill] sm:$0xff] }
  0x8a   : > { %766 = vmatprep.subr.bf16.mxu0 %v943_v6  ;;  %v1021_v4 = vcombine.high %v2123_v11, %v2122_v45  ;;  %v1020_v6 = vcombine.low %v2123_v11, %v2122_v45 }
  0x8d   : > { %767 = vmatpush1.bf16.msra.mxu0 %v942_v8  ;;  %v2124_v8 = vld [vmem:[#allocation71_spill] sm:$0xff] }
  0x8e   : > { %768 = vmatprep.subr.bf16.mxu0 %v937_v0  ;;  %v1015_v7 = vcombine.high %v2125_v5, %v2124_v8  ;;  %v1014_v0 = vcombine.low %v2125_v5, %v2124_v8  ;;  %v2133_v8 = vld [vmem:[#allocation52_spill] sm:$0xff] }
  0x91   : > { %769 = vmatpush1.bf16.msra.mxu0 %v936_v54  ;;  %v2126_v54 = vld [vmem:[#allocation69_spill] sm:$0xff] }
  0x92   : > { %770 = vmatprep.subr.bf16.mxu0 %v931_v2  ;;  %v1009_v1 = vcombine.high %v2127_v12, %v2126_v54  ;;  %v1008_v2 = vcombine.low %v2127_v12, %v2126_v54 }
  0x95   : > { %771 = vmatpush1.bf16.msra.mxu0 %v930_v3  ;;  %v2128_v3 = vld [vmem:[#allocation64_spill] sm:$0xff] }
  0x96   : > { %772 = vmatprep.subr.bf16.mxu0 %v1021_v4  ;;  %v1003_v11 = vcombine.high %v2129_v9, %v2128_v3  ;;  %v1002_v4 = vcombine.low %v2129_v9, %v2128_v3  ;;  %v2137_v9 = vld [vmem:[#allocation43_spill] sm:$0xff] }
  0x99   : > { %773 = vmatpush2.bf16.msra.mxu0 %v1020_v6  ;;  %v2130_v6 = vld [vmem:[#allocation58_spill] sm:$0xff] }
  0x9a   : > { %774 = vmatprep.subr.bf16.mxu0 %v1015_v7  ;;  %v997_v5 = vcombine.high %v2131_v13, %v2130_v6  ;;  %v996_v7 = vcombine.low %v2131_v13, %v2130_v6 }
  0x9d   : > { %775 = vmatpush2.bf16.msra.mxu0 %v1014_v0  ;;  %v2132_v0 = vld [vmem:[#allocation55_spill] sm:$0xff] }
  0x9e   : > { %776 = vmatprep.subr.bf16.mxu0 %v1009_v1  ;;  %v991_v12 = vcombine.high %v2133_v8, %v2132_v0  ;;  %v990_v1 = vcombine.low %v2133_v8, %v2132_v0 }
  0xa1   : > { %777 = vmatpush2.bf16.msra.mxu0 %v1008_v2  ;;  %v2134_v2 = vld [vmem:[#allocation50_spill] sm:$0xff] }
  0xa2   : > { %778 = vmatprep.subr.bf16.mxu0 %v1003_v11  ;;  %v985_v3 = vcombine.high %v2135_v14, %v2134_v2  ;;  %v984_v11 = vcombine.low %v2135_v14, %v2134_v2  ;;  %v2139_v14 = vld [vmem:[#allocation74_spill] sm:$0xff] }
  0xa5   : > { %779 = vmatpush2.bf16.msra.mxu0 %v1002_v4  ;;  %v2136_v4 = vld [vmem:[#allocation46_spill] sm:$0xff] }
  0xa6   : > { %780 = vmatprep.subr.bf16.mxu0 %v997_v5  ;;  %v979_v5 = vcombine.high %v2137_v9, %v2136_v4 }
  0xa9   : > { %781 = vmatpush2.bf16.msra.mxu0 %v996_v7  ;;  %v978_v7 = vcombine.low %v2137_v9, %v2136_v4 }
  0xaa   : > { %782 = vmatprep.subr.bf16.mxu0 %v991_v12 }
  0xad   : > { %783 = vmatpush2.bf16.msra.mxu0 %v990_v1 }
  0xae   : > { %784 = vmatprep.subr.bf16.mxu0 %v985_v3 }
  0xb1   : > { %785 = vmatpush2.bf16.msra.mxu0 %v984_v11  ;;  %v2138_v11 = vsub.s32 0, %v1657_v46 }
  0xb2   : > { %786 = vmatprep.subr.bf16.mxu0 %v979_v5  ;;  %v2140_v5 = vsub.s32 1, %v1657_v46 }
  0xb3   : > { %v647_v15 = vrot.slane %v2139_v14, %v2138_v11  ;;  %v654_v11 = vsub.s32 2, %v1657_v46 }
  0xb5   : > { %787 = vmatpush2.bf16.msra.mxu0 %v978_v7  ;;  %v651_v7 = vrot.slane %v2139_v14, %v2140_v5  ;;  %v658_v5 = vsub.s32 3, %v1657_v46 }
  0xb8   : > { %789 = vmatmul.mubr.bf16.vlgmr.msra.gmra.mxu0 %v1773_v10  ;;  %v1093_v10 = vmov 1966171168  }
  0xb9   : > { %v801_v4 = vunpack.c.l.s4 %v1093_v10 }
 0x137   : > { %v749_v2 = vpop.f32.mrf.mxu1 }
 0x138   : > { %v708_v12 = vpop.f32.mrf.mxu0 }
 0x139   : > { %v751_v6 = vpop.f32.mrf.mxu1 }
 0x13a   : > { %v710_v1 = vpop.f32.mrf.mxu0 }
 0x13b   : > { %v753_v8 = vpop.f32.mrf.mxu1  ;;  %v711_v9 = vadd.f32 %v710_v1, %v651_v7 }
 0x13c   : > { %v712_v0 = vpop.f32.mrf.mxu0 }
 0x13d   : > { %v754_v13 = vpop.f32.mrf.mxu1  ;;  %v709_v0 = vadd.f32 %v708_v12, %v647_v15  ;;  %v655_v15 = vrot.slane %v2139_v14, %v654_v11  ;;  %v149_v12 = vor.u32 %v148_v17, %v147_v16  ;;  %v662_v11 = vsub.s32 4, %v1657_v46 }
 0x13e   : > { %v713_v3 = vpop.f32.mrf.mxu0 }
 0x13f   : > { %v802_v3 = vunpack.c.0.s8 %v801_v4  ;;  %v799_v13 = vcombine.low %v709_v0, %v711_v9  ;;  %v659_v4 = vrot.slane %v2139_v14, %v658_v5  ;;  %v750_v9 = vadd.f32 %v749_v2, %v655_v15 }
 0x140   : > { %v823_v20 = vrot.slane %v149_v12, 2  ;;  %v666_v5 = vsub.s32 5, %v1657_v46  ;;  %v663_v16 = vrot.slane %v2139_v14, %v662_v11 }
 0x141   : > { %v805_v8 = vsub.s32 %v802_v3, %v1657_v46  ;;  %v752_v7 = vadd.f32 %v751_v6, %v659_v4 }
 0x142   : > { %v667_v17 = vrot.slane %v2139_v14, %v666_v5 }
 0x143   : > { %v806_v10 = vrot.slane %v799_v13, %v805_v8  ;;  %v827_v3 = vcombine.low %v750_v9, %v752_v7 }
 0x145   : > { %v813_v1 = vrot.slane %v806_v10, %v805_v8  ;;  %v834_v19 = vrot.slane %v827_v3, %v805_v8 }
 0x147   : > { %v815_v0 = vadd.f32 %v813_v1, %v149_v12  ;;  %v841_v21 = vrot.slane %v834_v19, %v805_v8  ;;  %v869_v1 = vrot.slane %v149_v12, 4 }
 0x149   : > { %v1022_v18 = vmul.f32 -1.442695, %v815_v0  ;;  %v843_v22 = vadd.f32 %v841_v21, %v823_v20 }
 0x14b   : > { %1045 = vpow2.f32 %v1022_v18  ;;  %v1023_v23 = vmul.f32 -1.442695, %v843_v22 }
 0x14d   : > { %1047 = vpow2.f32 %v1023_v23 }
 0x158   : > { %v1046_v13 = vpop.eup %1045 }
 0x159   : > { %v819_v24 = vadd.f32 1.0, %v1046_v13 }
 0x15a   : > { %v1048_v19 = vpop.eup %1047 }
 0x15b   : > { %1049 = vrcp.f32 %v819_v24  ;;  %v847_v21 = vadd.f32 1.0, %v1048_v19 }
 0x15d   : > { %1051 = vrcp.f32 %v847_v21 }
 0x168   : > { %v1050_v46 = vpop.eup %1049 }
 0x16a   : > { %v1052_v7 = vpop.eup %1051 }
 0x16b   : > { %v873_v0 = vsub.f32 1.0, %v1052_v7  ;;  %v875_v13 = vmul.f32 %v1087_v55, %v1052_v7 }
 0x178   : > { %v790_v6 = vpop.f32.mrf.mxu0 }
 0x179   : > { %v791_v10 = vadd.f32 %v790_v6, %v663_v16 }
 0x17a   : > { %v792_v2 = vpop.f32.mrf.mxu0 }
 0x17b   : > { %v793_v18 = vadd.f32 %v792_v2, %v667_v17 }
 0x17c   : > { %v794_v20 = vpop.f32.mrf.mxu0 }
 0x17d   : > { %v852_v22 = vcombine.low %v791_v10, %v793_v18 }
 0x17e   : > { %v795_v23 = vpop.f32.mrf.mxu0 }
 0x17f   : > { %v859_v15 = vrot.slane %v852_v22, %v805_v8 }
 0x181   : > { %v866_v4 = vrot.slane %v859_v15, %v805_v8 }
 0x183   : > { %v868_v24 = vmul.f32 %v1050_v46, %v866_v4 }
 0x185   : > { %v871_v9 = vadd.f32 %v869_v1, %v868_v24 }
 0x187   : > { %1053 = vtanh.f32 %v871_v9 }
 0x194   : > { %v1054_v3 = vpop.eup %1053 }
 0x195   : > { %v874_v11 = vmul.f32 %v1054_v3, %v873_v0 }
 0x197   : > { %v876_v5 = vadd.f32 %v875_v13, %v874_v11   ;;  %137 = sbr.rel (!%p134_p0) target bundleno = 44 (0x2c), region = 57 }
 0x199   : > { %v877_v8 = vmax.f32 %v876_v5, 0.0  ;;  %v2142_v55 = vmov %v876_v5  ;;  %892 = vst.msk [vmem:[#allocation2] sm:$0x3] (%p134_p0), %vm1149_vm0, %v876_v5 }
 0x19b   : > { %886 = vst.msk [vmem:[%s885_s16] ss:$8 sm:$0x3] %vm1149_vm0, %v877_v8 }
 0x19c   :  { %1066 = shalt.err (!%p1063_p5)
}
 0x19d   :  { %904 = dma.vmem_to_hbm [thread:$0]  %s902_s18, 32, %s1892_s5, [#allocation3]  }
 0x19e   :  { %1083 = dma.done.wait [#allocation3], 32  }
 0x19f   :  { %1084 = vsyncadd [#allocation3], 4294967264 }
 0x1a0   :  { %910 = vsyncpa [#allocation3], 1 }

</bundles_post_ra>
